<compile_context>
chip_gen: v6e
topology: v6e:2x2x1
jax: 0.10.0
libtpu: 0.0.40
codegen_flags: <defaults>
</compile_context>

<pallas_src>
import jax
import jax.numpy as jnp
import numpy as np
from jax import lax
from jax.experimental import pallas as pl
from jax.experimental.pallas import tpu as pltpu


# ----------------------------- kernel ---------------------------------------


def _shifted_patches(t):
    """(P, L) -> (P, 3L): [row p-1 | row p | row p+1], zero rows at the H halo."""
    P, L = t.shape
    z = jnp.zeros((1, L), t.dtype)
    up = jnp.concatenate([z, t[:P - 1, :]], axis=0)   # dp = -1: row p reads t[p-1]
    dn = jnp.concatenate([t[1:, :], z], axis=0)       # dp = +1: row p reads t[p+1]
    return jnp.concatenate([up, t, dn], axis=1)       # (P, 3L)


def _residual_block_kernel(x_ref, w1_ref, b1_ref, w2_ref, b2_ref, out_ref):
    """Fused residual block on one image in row-pair packed layout.

    x_ref:   (1, P, L)  packed input, lane j = h_off*(W*C) + w*C + c, h = 2p + h_off
    w*_ref:  (3L, L)    band weight matrices (dp = -1, 0, +1 blocks stacked on K)
    b*_ref:  (1, L)     bias broadcast over packed lanes
    out_ref: (1, P, L)
    """
    x = x_ref[0]                                                    # (P, L)

    # conv1 (single im2col matmul, K = 3L) + bias + ReLU
    y = jnp.dot(_shifted_patches(x), w1_ref[...],
                preferred_element_type=jnp.float32)
    y = jnp.maximum(y + b1_ref[...], 0.0)

    # conv2 + bias  (y never leaves VMEM)
    res = jnp.dot(_shifted_patches(y), w2_ref[...],
                  preferred_element_type=jnp.float32)
    res = res + b2_ref[...]

    # skip-add + final ReLU, lane-dense store
    out_ref[0] = jnp.maximum(x + res, 0.0).astype(out_ref.dtype)


# ------------------------- wrapper-side packing ------------------------------


def _pack_conv_as_band_matrix(w_oihw, width):
    """(C_out, C_in, 3, 3) conv weights -> (3L, L) band matrix, L = 2*width*C.

    Row-pair packed layout: lane j = h_off*(W*C) + w*C + c, h_off in {0, 1}.
    Returns the vertical concat of the dp = -1, 0, +1 blocks, so that
    (P, 3L) @ (3L, L) implements the whole 3x3 'same' convolution (W-direction
    zero padding is encoded by the band structure).
    """
    c_out, c_in, kh, kw = w_oihw.shape
    assert kh == 3 and kw == 3 and c_out == c_in
    C = c_in
    W = width
    L = 2 * W * C
    w_hwio = jnp.transpose(w_oihw, (2, 3, 1, 0))          # (ky, kx, C_in, C_out)
    w_flat = w_hwio.reshape(-1)

    blocks = []
    for dp in (-1, 0, 1):
        rows, cols, gidx = [], [], []
        for ho_o in range(2):
            for dy in range(3):
                h_rel = ho_o + dy - 1                     # relative input h
                if h_rel // 2 != dp:
                    continue
                ho_i = h_rel - 2 * dp
                for dx in range(3):
                    for w_o in range(W):
                        w_i = w_o + dx - 1
                        if not 0 <= w_i < W:
                            continue                      # implicit zero pad in W
                        for ci in range(C):
                            for co in range(C):
                                rows.append(ho_i * W * C + w_i * C + ci)
                                cols.append(ho_o * W * C + w_o * C + co)
                                gidx.append(((dy * 3 + dx) * C + ci) * C + co)
        rows = np.asarray(rows, np.int32)
        cols = np.asarray(cols, np.int32)
        gidx = np.asarray(gidx, np.int32)
        blk = jnp.zeros((L, L), w_flat.dtype).at[rows, cols].set(w_flat[gidx])
        blocks.append(blk)
    return jnp.concatenate(blocks, axis=0)                # (3L, L)


@jax.jit
def residual_block_forward(x_nchw, w1, b1, w2, b2):
    """x_nchw: (N, C, H, W) f32.  w*: (C, C, 3, 3) PyTorch OIHW.  b*: (C,)."""
    N, C, H, W = x_nchw.shape
    assert H % 2 == 0, "row-pair packing requires even H"
    P = H // 2
    L = 2 * W * C

    # Layout plumbing (pure reshape/transpose) stays in the wrapper.
    x_packed = jnp.transpose(x_nchw, (0, 2, 3, 1)).reshape(N, P, L)
    w1p = _pack_conv_as_band_matrix(w1, W)
    w2p = _pack_conv_as_band_matrix(w2, W)
    b1p = jnp.tile(b1, 2 * W).reshape(1, L)
    b2p = jnp.tile(b2, 2 * W).reshape(1, L)

    grid_spec = pltpu.PrefetchScalarGridSpec(
        num_scalar_prefetch=0,
        grid=(N,),
        in_specs=[
            pl.BlockSpec((1, P, L), lambda n: (n, 0, 0)),   # packed activation
            pl.BlockSpec((3 * L, L), lambda n: (0, 0)),     # conv1 band weights
            pl.BlockSpec((1, L), lambda n: (0, 0)),         # bias1
            pl.BlockSpec((3 * L, L), lambda n: (0, 0)),     # conv2 band weights
            pl.BlockSpec((1, L), lambda n: (0, 0)),         # bias2
        ],
        out_specs=pl.BlockSpec((1, P, L), lambda n: (n, 0, 0)),
    )

    out_packed = pl.pallas_call(
        _residual_block_kernel,
        out_shape=jax.ShapeDtypeStruct((N, P, L), jnp.float32),
        grid_spec=grid_spec,
        compiler_params=pltpu.CompilerParams(
            dimension_semantics=("parallel",)),
    )(x_packed, w1p, b1p, w2p, b2p)

    out_nhwc = out_packed.reshape(N, H, W, C)
    return jnp.transpose(out_nhwc, (0, 3, 1, 2))            # back to NCHW


# ------------------------------ reference ------------------------------------


def _reference(x, w1, b1, w2, b2):
    """Pure-JAX reference (lax conv, NCHW/OIHW) for the correctness check."""
    dn = ('NCHW', 'OIHW', 'NCHW')

    def conv(inp, w, b):
        y = lax.conv_general_dilated(inp, w, window_strides=(1, 1),
                                     padding='SAME', dimension_numbers=dn)
        return y + b.reshape(1, -1, 1, 1)

    y = jax.nn.relu(conv(x, w1, b1))
    return jax.nn.relu(x + conv(y, w2, b2))


if __name__ == "__main__":
    key = jax.random.PRNGKey(0)
    k_x, k_w1, k_b1, k_w2, k_b2 = jax.random.split(key, 5)

    N, C, H, W = 2, 4, 16, 16
    x = jax.random.normal(k_x, (N, C, H, W), dtype=jnp.float32)

    # Deterministic synthetic parameters, PyTorch Conv2d layout (C_out, C_in, 3, 3).
    scale = 1.0 / np.sqrt(C * 9)
    w1 = jax.random.normal(k_w1, (C, C, 3, 3), dtype=jnp.float32) * scale
    b1 = jax.random.normal(k_b1, (C,), dtype=jnp.float32) * scale
    w2 = jax.random.normal(k_w2, (C, C, 3, 3), dtype=jnp.float32) * scale
    b2 = jax.random.normal(k_b2, (C,), dtype=jnp.float32) * scale

    out = jax.block_until_ready(residual_block_forward(x, w1, b1, w2, b2))
    ref = jax.block_until_ready(_reference(x, w1, b1, w2, b2))
    np.testing.assert_allclose(np.asarray(out), np.asarray(ref),
                               rtol=1e-4, atol=1e-4)

    print("KERNEL_OK")
</pallas_src>

<mosaic_0001>
module attributes {stable_mosaic.version = 11 : i64} {
  func.func @_residual_block_kernel(%arg0: i32, %arg1: memref<1x8x128xf32, #tpu.memory_space<vmem>>, %arg2: memref<384x128xf32, #tpu.memory_space<vmem>>, %arg3: memref<1x128xf32, #tpu.memory_space<vmem>>, %arg4: memref<384x128xf32, #tpu.memory_space<vmem>>, %arg5: memref<1x128xf32, #tpu.memory_space<vmem>>, %arg6: memref<1x8x128xf32, #tpu.memory_space<vmem>>) attributes {dimension_semantics = [#tpu.dimension_semantics<parallel>], iteration_bounds = array<i64: 2>, scalar_prefetch = 0 : i64, scratch_operands = 0 : i64, tpu.core_type = #tpu.core_type<tc>, window_params = [{transform_indices = @transform_0, window_bounds = array<i64: 1, 8, 128>}, {pipeline_mode = #tpu.pipeline_mode<synchronous>, transform_indices = @transform_1, window_bounds = array<i64: 384, 128>}, {pipeline_mode = #tpu.pipeline_mode<synchronous>, transform_indices = @transform_2, window_bounds = array<i64: 1, 128>}, {pipeline_mode = #tpu.pipeline_mode<synchronous>, transform_indices = @transform_3, window_bounds = array<i64: 384, 128>}, {pipeline_mode = #tpu.pipeline_mode<synchronous>, transform_indices = @transform_4, window_bounds = array<i64: 1, 128>}, {transform_indices = @transform_5, window_bounds = array<i64: 1, 8, 128>}]} {
    %c0 = arith.constant 0 : index
    %c0_0 = arith.constant 0 : index
    %c0_1 = arith.constant 0 : index
    %0 = vector.load %arg1[%c0, %c0_0, %c0_1] : memref<1x8x128xf32, #tpu.memory_space<vmem>>, vector<1x8x128xf32>
    %1 = vector.shape_cast %0 : vector<1x8x128xf32> to vector<8x128xf32>
    %cst = arith.constant 0.000000e+00 : f32
    %2 = vector.broadcast %cst : f32 to vector<1x128xf32>
    %3 = vector.extract_strided_slice %1 {offsets = [0, 0], sizes = [7, 128], strides = [1, 1]} : vector<8x128xf32> to vector<7x128xf32>
    %4 = tpu.concatenate %2, %3 in 0 : vector<1x128xf32>, vector<7x128xf32> -> vector<8x128xf32>
    %5 = vector.extract_strided_slice %1 {offsets = [1, 0], sizes = [7, 128], strides = [1, 1]} : vector<8x128xf32> to vector<7x128xf32>
    %6 = tpu.concatenate %5, %2 in 0 : vector<7x128xf32>, vector<1x128xf32> -> vector<8x128xf32>
    %7 = tpu.concatenate %4, %1, %6 in 1 : vector<8x128xf32>, vector<8x128xf32>, vector<8x128xf32> -> vector<8x384xf32>
    %c0_2 = arith.constant 0 : index
    %c0_3 = arith.constant 0 : index
    %8 = vector.load %arg2[%c0_2, %c0_3] : memref<384x128xf32, #tpu.memory_space<vmem>>, vector<384x128xf32>
    %cst_4 = arith.constant dense<0.000000e+00> : vector<8x128xf32>
    %9 = tpu.matmul %7, %8, %cst_4 {dimension_numbers = #tpu.dot_dimension_numbers<[1], [0], [0], [1], [0, 0, 1, 1], [], []>} : vector<8x384xf32>, vector<384x128xf32>, vector<8x128xf32> -> vector<8x128xf32>
    %c0_5 = arith.constant 0 : index
    %c0_6 = arith.constant 0 : index
    %10 = vector.load %arg3[%c0_5, %c0_6] : memref<1x128xf32, #tpu.memory_space<vmem>>, vector<1x128xf32>
    %11 = vector.broadcast %10 : vector<1x128xf32> to vector<8x128xf32>
    %12 = arith.addf %9, %11 : vector<8x128xf32>
    %cst_7 = arith.constant 0.000000e+00 : f32
    %13 = vector.broadcast %cst_7 : f32 to vector<8x128xf32>
    %14 = arith.maximumf %12, %13 : vector<8x128xf32>
    %cst_8 = arith.constant 0.000000e+00 : f32
    %15 = vector.broadcast %cst_8 : f32 to vector<1x128xf32>
    %16 = vector.extract_strided_slice %14 {offsets = [0, 0], sizes = [7, 128], strides = [1, 1]} : vector<8x128xf32> to vector<7x128xf32>
    %17 = tpu.concatenate %15, %16 in 0 : vector<1x128xf32>, vector<7x128xf32> -> vector<8x128xf32>
    %18 = vector.extract_strided_slice %14 {offsets = [1, 0], sizes = [7, 128], strides = [1, 1]} : vector<8x128xf32> to vector<7x128xf32>
    %19 = tpu.concatenate %18, %15 in 0 : vector<7x128xf32>, vector<1x128xf32> -> vector<8x128xf32>
    %20 = tpu.concatenate %17, %14, %19 in 1 : vector<8x128xf32>, vector<8x128xf32>, vector<8x128xf32> -> vector<8x384xf32>
    %c0_9 = arith.constant 0 : index
    %c0_10 = arith.constant 0 : index
    %21 = vector.load %arg4[%c0_9, %c0_10] : memref<384x128xf32, #tpu.memory_space<vmem>>, vector<384x128xf32>
    %cst_11 = arith.constant dense<0.000000e+00> : vector<8x128xf32>
    %22 = tpu.matmul %20, %21, %cst_11 {dimension_numbers = #tpu.dot_dimension_numbers<[1], [0], [0], [1], [0, 0, 1, 1], [], []>} : vector<8x384xf32>, vector<384x128xf32>, vector<8x128xf32> -> vector<8x128xf32>
    %c0_12 = arith.constant 0 : index
    %c0_13 = arith.constant 0 : index
    %23 = vector.load %arg5[%c0_12, %c0_13] : memref<1x128xf32, #tpu.memory_space<vmem>>, vector<1x128xf32>
    %24 = vector.broadcast %23 : vector<1x128xf32> to vector<8x128xf32>
    %25 = arith.addf %22, %24 : vector<8x128xf32>
    %26 = arith.addf %1, %25 : vector<8x128xf32>
    %cst_14 = arith.constant 0.000000e+00 : f32
    %27 = vector.broadcast %cst_14 : f32 to vector<8x128xf32>
    %28 = arith.maximumf %26, %27 : vector<8x128xf32>
    %c0_15 = arith.constant 0 : index
    %c0_16 = arith.constant 0 : index
    %c0_17 = arith.constant 0 : index
    %29 = vector.load %arg6[%c0_15, %c0_16, %c0_17] : memref<1x8x128xf32, #tpu.memory_space<vmem>>, vector<1x8x128xf32>
    %30 = vector.shape_cast %29 : vector<1x8x128xf32> to vector<8x128xf32>
    %31 = vector.shape_cast %28 : vector<8x128xf32> to vector<1x8x128xf32>
    tpu.vector_store %arg6[%c0_15, %c0_16, %c0_17], %31 {strides = array<i32>} : memref<1x8x128xf32, #tpu.memory_space<vmem>>, vector<1x8x128xf32>,
    return
  }
  func.func @transform_0(%arg0: i32) -> (i32, i32, i32) {
    %c0_i32 = arith.constant 0 : i32
    %c0_i32_0 = arith.constant 0 : i32
    %c0_i32_1 = arith.constant 0 : i32
    return %arg0, %c0_i32, %c0_i32_0 : i32, i32, i32
  }
  func.func @transform_1(%arg0: i32) -> (i32, i32) {
    %c0_i32 = arith.constant 0 : i32
    %c0_i32_0 = arith.constant 0 : i32
    %c0_i32_1 = arith.constant 0 : i32
    return %c0_i32, %c0_i32_0 : i32, i32
  }
  func.func @transform_2(%arg0: i32) -> (i32, i32) {
    %c0_i32 = arith.constant 0 : i32
    %c0_i32_0 = arith.constant 0 : i32
    %c0_i32_1 = arith.constant 0 : i32
    return %c0_i32, %c0_i32_0 : i32, i32
  }
  func.func @transform_3(%arg0: i32) -> (i32, i32) {
    %c0_i32 = arith.constant 0 : i32
    %c0_i32_0 = arith.constant 0 : i32
    %c0_i32_1 = arith.constant 0 : i32
    return %c0_i32, %c0_i32_0 : i32, i32
  }
  func.func @transform_4(%arg0: i32) -> (i32, i32) {
    %c0_i32 = arith.constant 0 : i32
    %c0_i32_0 = arith.constant 0 : i32
    %c0_i32_1 = arith.constant 0 : i32
    return %c0_i32, %c0_i32_0 : i32, i32
  }
  func.func @transform_5(%arg0: i32) -> (i32, i32, i32) {
    %c0_i32 = arith.constant 0 : i32
    %c0_i32_0 = arith.constant 0 : i32
    %c0_i32_1 = arith.constant 0 : i32
    return %arg0, %c0_i32, %c0_i32_0 : i32, i32, i32
  }
}

</mosaic_0001>

<bundles_post_ra>
// kernel: tile.13
= control target key start
LH: loop header
LB: loop body
LE: loop exit
PB: predicated region body
PF: predicated region fallthrough
CT: control target
= control target key end

     0   :  { %s40_s0 = inlined_call_operand.vmem [shape: f32[4], index: 0, kind: input, shape index: {}]   ;;  %s41_s1 = inlined_call_operand.vmem [shape: f32[32,4], index: 1, kind: output, shape index: {}]  }
   0x1   :  { %v4_v0 = vld [vmem:[%s40_s0] ss:$0 sm:$0xff] }
   0x2   :  { %5 = vst [vmem:[%s41_s1] sm:$0xff] %v4_v0  ;;  %12 = vst [vmem:[%s41_s1 + $0x8] sm:$0xff] %v4_v0 }
   0x3   :  { %13 = vst [vmem:[%s41_s1 + $0x10] sm:$0xff] %v4_v0  ;;  %14 = vst [vmem:[%s41_s1 + $0x18] sm:$0xff] %v4_v0 }

// kernel: tile.14
= control target key start
LH: loop header
LB: loop body
LE: loop exit
PB: predicated region body
PF: predicated region fallthrough
CT: control target
= control target key end

     0   :  { %s261_s10 = smov 124   ;;  %s262_s11 = smov 116   ;;  %vm3_vm0 = vcmask 31744   ;;  %vm9_vm1 = vcmask 1048544   ;;  %vm15_vm2 = vcmask 1015744   ;;  %vm21_vm3 = vcmask 982944   ;;  %s401_s0 = inlined_call_operand.vmem [shape: f32[32,4], index: 0, kind: input, shape index: {}]   ;;  %s402_s1 = inlined_call_operand.vmem [shape: f32[1,128], index: 1, kind: output, shape index: {}]  }
   0x1   :  { %v199_v0 = vld [vmem:[%s401_s0 + $0x1f] sm:$0x1]   ;;  %v201_v1 = vld [vmem:[%s401_s0 + $0x1d] sm:$0x1]   ;;  %v200_v2 = vld [vmem:[%s401_s0 + $0x1e] sm:$0x1]  }
   0x2   :  { %7 = vrot.lane.b32.xlu0 %v199_v0, %s261_s10  ;;  %19 = vrot.lane.b32.xlu1 %v201_v1, %s262_s11  ;;  %v202_v3 = vld [vmem:[%s401_s0 + $0x1c] sm:$0x1]   ;;  %s263_s16 = smov 120   ;;  %s264_s17 = smov 112   ;;  %v203_v4 = vld [vmem:[%s401_s0 + $0x1b] sm:$0x1]  }
   0x3   :  { %v204_v5 = vld [vmem:[%s401_s0 + $0x1a] sm:$0x1]   ;;  %s265_s22 = smov 108   ;;  %s266_s23 = smov 104   ;;  %v205_v6 = vld [vmem:[%s401_s0 + $0x19] sm:$0x1]  }
   0x4   :  { %v206_v7 = vld [vmem:[%s401_s0 + $0x18] sm:$0x1]   ;;  %s267_s28 = smov 100   ;;  %s268_s29 = smov 96   ;;  %v207_v8 = vld [vmem:[%s401_s0 + $0x17] sm:$0x1]  }
   0x5   :  { %v208_v9 = vld [vmem:[%s401_s0 + $0x16] sm:$0x1]   ;;  %v2_v10 = vld [vmem:[%s401_s0] sm:$0x1]   ;;  %s269_s7 = smov 92   ;;  %s270_s8 = smov 88  }
   0x6   :  { %13 = vrot.lane.b32.xlu0 %v200_v2, %s263_s16  ;;  %25 = vrot.lane.b32.xlu1 %v202_v3, %s264_s17  ;;  %4 = vst.msk [vmem:[#allocation0] sm:$0x1] %vm3_vm0, %v2_v10   ;;  %v209_v11 = vld [vmem:[%s401_s0 + $0x15] sm:$0x1]   ;;  %v210_v12 = vld [vmem:[%s401_s0 + $0x14] sm:$0x1]  }
   0x7   :  { %s271_s13 = smov 84   ;;  %s272_s14 = smov 80   ;;  %v211_v13 = vld [vmem:[%s401_s0 + $0x13] sm:$0x1]   ;;  %v212_v14 = vld [vmem:[%s401_s0 + $0x12] sm:$0x1]  }
   0x8   :  { %s273_s19 = smov 76   ;;  %s274_s20 = smov 72   ;;  %v213_v15 = vld [vmem:[%s401_s0 + $0x11] sm:$0x1]   ;;  %v214_v16 = vld [vmem:[%s401_s0 + $0x10] sm:$0x1]  }
   0x9   :  { %s275_s25 = smov 68   ;;  %s276_s26 = smov 64   ;;  %v215_v17 = vld [vmem:[%s401_s0 + $0xf] sm:$0x1]   ;;  %v216_v18 = vld [vmem:[%s401_s0 + $0xe] sm:$0x1]  }
   0xa   :  { %31 = vrot.lane.b32.xlu0 %v203_v4, %s265_s22  ;;  %37 = vrot.lane.b32.xlu1 %v204_v5, %s266_s23  ;;  %s277_s2 = smov 60   ;;  %s278_s3 = smov 56   ;;  %v217_v19 = vld [vmem:[%s401_s0 + $0xd] sm:$0x1]   ;;  %v218_v20 = vld [vmem:[%s401_s0 + $0xc] sm:$0x1]  }
   0xb   :  { %s280_s9 = smov 48   ;;  %v219_v21 = vld [vmem:[%s401_s0 + $0xb] sm:$0x1]   ;;  %v220_v22 = vld [vmem:[%s401_s0 + $0xa] sm:$0x1]   ;;  %s282_s15 = smov 40  }
   0xc   :  { %v221_v23 = vld [vmem:[%s401_s0 + $0x9] sm:$0x1]   ;;  %v222_v24 = vld [vmem:[%s401_s0 + $0x8] sm:$0x1]   ;;  %s284_s21 = smov 32   ;;  %s286_s27 = smov 24  }
   0xd   :  { %v223_v25 = vld [vmem:[%s401_s0 + $0x7] sm:$0x1]   ;;  %v224_v26 = vld [vmem:[%s401_s0 + $0x6] sm:$0x1]   ;;  %v225_v27 = vld [vmem:[%s401_s0 + $0x5] sm:$0x1]  }
   0xe   :  { %43 = vrot.lane.b32.xlu0 %v205_v6, %s267_s28  ;;  %49 = vrot.lane.b32.xlu1 %v206_v7, %s268_s29  ;;  %v226_v28 = vld [vmem:[%s401_s0 + $0x4] sm:$0x1]   ;;  %s288_s4 = smov 16   ;;  %v227_v29 = vld [vmem:[%s401_s0 + $0x3] sm:$0x1]   ;;  %s290_s10 = smov 8  }
   0xf   :  { %v228_v30 = vld [vmem:[%s401_s0 + $0x2] sm:$0x1]   ;;  %v229_v31 = vld [vmem:[%s401_s0 + $0x1] sm:$0x1]   ;;  %s291_s0 = smov 4   ;;  %vm27_vm4 = vcmask 950144  }
  0x10   :  { %vm33_vm5 = vcmask 917344   ;;  %vm39_vm6 = vcmask 884544   ;;  %vm45_vm7 = vcmask 851744   ;;  %vm51_vm8 = vcmask 818944  }
  0x11   :  { %vm57_vm9 = vcmask 786144   ;;  %vm63_vm10 = vcmask 753344   ;;  %vm69_vm11 = vcmask 720544   ;;  %vm75_vm12 = vcmask 687744  }
  0x12   :  { %55 = vrot.lane.b32.xlu0 %v207_v8, %s269_s7  ;;  %61 = vrot.lane.b32.xlu1 %v208_v9, %s270_s8  ;;  %s279_s8 = smov 52   ;;  %vm81_vm13 = vcmask 654944   ;;  %vm87_vm14 = vcmask 622144   ;;  %vm93_vm15 = vcmask 589344   ;;  %vm99_vm0 = vcmask 556544  }
  0x16   :  { %67 = vrot.lane.b32.xlu0 %v209_v11, %s271_s13  ;;  %73 = vrot.lane.b32.xlu1 %v210_v12, %s272_s14  ;;  %s281_s14 = smov 44  }
  0x1a   :  { %79 = vrot.lane.b32.xlu0 %v211_v13, %s273_s19  ;;  %85 = vrot.lane.b32.xlu1 %v212_v14, %s274_s20  ;;  %s283_s20 = smov 36  }
  0x1e   :  { %91 = vrot.lane.b32.xlu0 %v213_v15, %s275_s25  ;;  %97 = vrot.lane.b32.xlu1 %v214_v16, %s276_s26  ;;  %s285_s26 = smov 28  }
  0x22   :  { %103 = vrot.lane.b32.xlu0 %v215_v17, %s277_s2  ;;  %109 = vrot.lane.b32.xlu1 %v216_v18, %s278_s3  ;;  %s287_s3 = smov 20  }
  0x26   :  { %115 = vrot.lane.b32.xlu0 %v217_v19, %s279_s8  ;;  %121 = vrot.lane.b32.xlu1 %v218_v20, %s280_s9  ;;  %s289_s9 = smov 12  }
  0x2a   :  { %127 = vrot.lane.b32.xlu0 %v219_v21, %s281_s14  ;;  %133 = vrot.lane.b32.xlu1 %v220_v22, %s282_s15 }
  0x2e   :  { %139 = vrot.lane.b32.xlu0 %v221_v23, %s283_s20  ;;  %145 = vrot.lane.b32.xlu1 %v222_v24, %s284_s21 }
  0x32   :  { %151 = vrot.lane.b32.xlu0 %v223_v25, %s285_s26  ;;  %157 = vrot.lane.b32.xlu1 %v224_v26, %s286_s27 }
  0x36   :  { %163 = vrot.lane.b32.xlu0 %v225_v27, %s287_s3  ;;  %169 = vrot.lane.b32.xlu1 %v226_v28, %s288_s4 }
  0x3a   :  { %175 = vrot.lane.b32.xlu0 %v227_v29, %s289_s9  ;;  %181 = vrot.lane.b32.xlu1 %v228_v30, %s290_s10 }
  0x3e   :  { %187 = vrot.lane.b32.xlu0 %v229_v31, %s291_s0 }
  0x74   :  { %v8_v32 = vpop.permute.xlu0 %7   ;;  %v20_v33 = vpop.permute.xlu1 %19  }
  0x75   :  { %10 = vst.msk [vmem:[#allocation0] sm:$0x1] %vm9_vm1, %v8_v32   ;;  %vm105_vm1 = vcmask 523744  }
  0x78   :  { %v14_v34 = vpop.permute.xlu0 %13   ;;  %v26_v35 = vpop.permute.xlu1 %25  }
  0x79   :  { %16 = vst.msk [vmem:[#allocation0] sm:$0x1] %vm15_vm2, %v14_v34   ;;  %vm111_vm2 = vcmask 490944  }
  0x7a   :  { %22 = vst.msk [vmem:[#allocation0] sm:$0x1] %vm21_vm3, %v20_v33   ;;  %vm117_vm3 = vcmask 458144  }
  0x7b   :  { %28 = vst.msk [vmem:[#allocation0] sm:$0x1] %vm27_vm4, %v26_v35   ;;  %vm123_vm4 = vcmask 425344  }
  0x7c   :  { %v32_v36 = vpop.permute.xlu0 %31   ;;  %v38_v37 = vpop.permute.xlu1 %37  }
  0x7d   :  { %34 = vst.msk [vmem:[#allocation0] sm:$0x1] %vm33_vm5, %v32_v36   ;;  %vm129_vm5 = vcmask 392544  }
  0x7e   :  { %40 = vst.msk [vmem:[#allocation0] sm:$0x1] %vm39_vm6, %v38_v37   ;;  %vm135_vm6 = vcmask 359744  }
  0x80   :  { %v44_v38 = vpop.permute.xlu0 %43   ;;  %v50_v39 = vpop.permute.xlu1 %49  }
  0x81   :  { %46 = vst.msk [vmem:[#allocation0] sm:$0x1] %vm45_vm7, %v44_v38   ;;  %vm141_vm7 = vcmask 326944  }
  0x82   :  { %52 = vst.msk [vmem:[#allocation0] sm:$0x1] %vm51_vm8, %v50_v39   ;;  %vm147_vm8 = vcmask 294144  }
  0x84   :  { %v56_v40 = vpop.permute.xlu0 %55   ;;  %v62_v41 = vpop.permute.xlu1 %61  }
  0x85   :  { %58 = vst.msk [vmem:[#allocation0] sm:$0x1] %vm57_vm9, %v56_v40   ;;  %vm153_vm9 = vcmask 261344  }
  0x86   :  { %64 = vst.msk [vmem:[#allocation0] sm:$0x1] %vm63_vm10, %v62_v41   ;;  %vm159_vm10 = vcmask 228544  }
  0x88   :  { %v68_v42 = vpop.permute.xlu0 %67   ;;  %v74_v43 = vpop.permute.xlu1 %73  }
  0x89   :  { %70 = vst.msk [vmem:[#allocation0] sm:$0x1] %vm69_vm11, %v68_v42   ;;  %vm165_vm11 = vcmask 195744  }
  0x8a   :  { %76 = vst.msk [vmem:[#allocation0] sm:$0x1] %vm75_vm12, %v74_v43   ;;  %vm171_vm12 = vcmask 162944  }
  0x8c   :  { %v80_v44 = vpop.permute.xlu0 %79   ;;  %v86_v45 = vpop.permute.xlu1 %85  }
  0x8d   :  { %82 = vst.msk [vmem:[#allocation0] sm:$0x1] %vm81_vm13, %v80_v44   ;;  %vm177_vm13 = vcmask 130144  }
  0x8e   :  { %88 = vst.msk [vmem:[#allocation0] sm:$0x1] %vm87_vm14, %v86_v45   ;;  %vm183_vm14 = vcmask 97344  }
  0x90   :  { %v92_v46 = vpop.permute.xlu0 %91   ;;  %v98_v47 = vpop.permute.xlu1 %97  }
  0x91   :  { %94 = vst.msk [vmem:[#allocation0] sm:$0x1] %vm93_vm15, %v92_v46   ;;  %vm189_vm15 = vcmask 64544  }
  0x92   :  { %100 = vst.msk [vmem:[#allocation0] sm:$0x1] %vm99_vm0, %v98_v47  }
  0x94   :  { %v104_v48 = vpop.permute.xlu0 %103   ;;  %v110_v49 = vpop.permute.xlu1 %109  }
  0x95   :  { %106 = vst.msk [vmem:[#allocation0] sm:$0x1] %vm105_vm1, %v104_v48  }
  0x96   :  { %112 = vst.msk [vmem:[#allocation0] sm:$0x1] %vm111_vm2, %v110_v49  }
  0x98   :  { %v116_v50 = vpop.permute.xlu0 %115   ;;  %v122_v51 = vpop.permute.xlu1 %121  }
  0x99   :  { %118 = vst.msk [vmem:[#allocation0] sm:$0x1] %vm117_vm3, %v116_v50  }
  0x9a   :  { %124 = vst.msk [vmem:[#allocation0] sm:$0x1] %vm123_vm4, %v122_v51  }
  0x9c   :  { %v128_v52 = vpop.permute.xlu0 %127   ;;  %v134_v53 = vpop.permute.xlu1 %133  }
  0x9d   :  { %130 = vst.msk [vmem:[#allocation0] sm:$0x1] %vm129_vm5, %v128_v52  }
  0x9e   :  { %136 = vst.msk [vmem:[#allocation0] sm:$0x1] %vm135_vm6, %v134_v53  }
  0xa0   :  { %v140_v54 = vpop.permute.xlu0 %139   ;;  %v146_v55 = vpop.permute.xlu1 %145  }
  0xa1   :  { %142 = vst.msk [vmem:[#allocation0] sm:$0x1] %vm141_vm7, %v140_v54  }
  0xa2   :  { %148 = vst.msk [vmem:[#allocation0] sm:$0x1] %vm147_vm8, %v146_v55  }
  0xa4   :  { %v152_v56 = vpop.permute.xlu0 %151   ;;  %v158_v57 = vpop.permute.xlu1 %157  }
  0xa5   :  { %154 = vst.msk [vmem:[#allocation0] sm:$0x1] %vm153_vm9, %v152_v56  }
  0xa6   :  { %160 = vst.msk [vmem:[#allocation0] sm:$0x1] %vm159_vm10, %v158_v57  }
  0xa8   :  { %v164_v58 = vpop.permute.xlu0 %163   ;;  %v170_v59 = vpop.permute.xlu1 %169  }
  0xa9   :  { %166 = vst.msk [vmem:[#allocation0] sm:$0x1] %vm165_vm11, %v164_v58  }
  0xaa   :  { %172 = vst.msk [vmem:[#allocation0] sm:$0x1] %vm171_vm12, %v170_v59  }
  0xac   :  { %v176_v60 = vpop.permute.xlu0 %175   ;;  %v182_v61 = vpop.permute.xlu1 %181  }
  0xad   :  { %178 = vst.msk [vmem:[#allocation0] sm:$0x1] %vm177_vm13, %v176_v60  }
  0xae   :  { %184 = vst.msk [vmem:[#allocation0] sm:$0x1] %vm183_vm14, %v182_v61  }
  0xb0   :  { %v188_v62 = vpop.permute.xlu0 %187  }
  0xb1   :  { %190 = vst.msk [vmem:[#allocation0] sm:$0x1] %vm189_vm15, %v188_v62  }
  0xb8   :  { %v195_v63 = vld [vmem:[#allocation0] sm:$0x1] }
  0xb9   :  { %198 = vst [vmem:[%s402_s1] sm:$0x1] %v195_v63 }

// kernel: residual_block_forward.1
= control target key start
LH: loop header
LB: loop body
LE: loop exit
PB: predicated region body
PF: predicated region fallthrough
CT: control target
= control target key end

     0   :  { %s925_s18 = smov 0   ;;  %s1305_s0 = inlined_call_operand.vmem [shape: f32[2,8,128], index: 0, kind: input, shape index: {}]   ;;  %s1306_s1 = inlined_call_operand.vmem [shape: f32[384,128], index: 1, kind: input, shape index: {}]   ;;  %s1307_s2 = inlined_call_operand.vmem [shape: f32[1,128], index: 2, kind: input, shape index: {}]   ;;  %s1308_s3 = inlined_call_operand.vmem [shape: f32[384,128], index: 3, kind: input, shape index: {}]   ;;  %s1309_s4 = inlined_call_operand.vmem [shape: f32[1,128], index: 4, kind: input, shape index: {}]   ;;  %s1310_s5 = inlined_call_operand.vmem [shape: f32[2,8,128], index: 5, kind: output, shape index: {}]  }
   0x1 LB: > { %s684_s19 = sadd.s32 4294967295, %s891_s18   ;;  %p688_p0 = scmp.ge.s32.totalorder %s891_s18, 1  ;;  %s891_s18 = sphi %s925_s18, %s15_s18  }
   0x2   : > { %p186_p1 = scmp.lt.s32.totalorder %s891_s18, 3 }
   0x4   : > { %p187_p2 = pnand %p688_p0, %p186_p1 }
   0x5   : > { %p1009_p3 = scmp.lt.s32.totalorder (!%p187_p2), %s684_s19, 1 }
   0x6   : > { %190 = sbr.rel (%p187_p2) target bundleno = 455 (0x1c7), region = 40 }
   0xb   : > { %v261_v0 = vld [vmem:[%s1306_s1 + $0xf8] sm:$0xff]  ;;  %v260_v2 = vld [vmem:[%s1306_s1 + $0xf0] sm:$0xff]  ;;  %v893_v4 = vmov 0.0   ;;  %v259_v5 = vld [vmem:[%s1306_s1 + $0xe8] sm:$0xff]  ;;  %vm894_vm0 = vmmov 0   ;;  %s1315_s19 = smov (!%p1009_p3, %s684_s19), 1 }
   0xc   : > { %v245_v1 = vld [vmem:[%s1306_s1 + $0x78] sm:$0xff]  ;;  %701 = vmatprep.subr.mxu0 %v261_v0  ;;  %v244_v3 = vld [vmem:[%s1306_s1 + $0x70] sm:$0xff]  ;;  %805 = vmatprep.subr.mxu1 %v893_v4  ;;  %v243_v7 = vld [vmem:[%s1306_s1 + $0x68] sm:$0xff]  ;;  %s689_s20 = sshll.u32 %s1315_s19, 3  ;;  %vm224_vm1 = vcmask 1040384   ;;  %vm228_vm3 = vcmask 1046528  }
   0xd   : > { %702 = vmatpush3.msra.mxu0 %v245_v1  ;;  %v277_v6 = vld [vmem:[%s1306_s1 + $0x178] sm:$0xff]  ;;  %837 = vmatprep.mubr.msk.f32.mxu1 %vm894_vm0, %v893_v4  ;;  %v276_v8 = vld [vmem:[%s1306_s1 + $0x170] sm:$0xff]  ;;  %v258_v9 = vld [vmem:[%s1306_s1 + $0xe0] sm:$0xff]  ;;  %s215_s6 = scalar_lea.vmem %s1305_s0, %s689_s20  ;;  %s219_s22 = scalar_lea.vmem %s1310_s5, %s689_s20 }
   0xe   : > { %703 = vmatprep.subr.mxu0 %v260_v2  ;;  %806 = vmatpush3.msra.mxu1 %v277_v6  ;;  %v275_v10 = vld [vmem:[%s1306_s1 + $0x168] sm:$0xff]  ;;  %v242_v11 = vld [vmem:[%s1306_s1 + $0x60] sm:$0xff]  ;;  %v257_v12 = vld [vmem:[%s1306_s1 + $0xd8] sm:$0xff] }
   0xf   : > { %704 = vmatpush3.msra.mxu0 %v244_v3  ;;  %807 = vmatprep.subr.mxu1 %v893_v4  ;;  %v274_v13 = vld [vmem:[%s1306_s1 + $0x160] sm:$0xff]  ;;  %v241_v14 = vld [vmem:[%s1306_s1 + $0x58] sm:$0xff]  ;;  %v256_v15 = vld [vmem:[%s1306_s1 + $0xd0] sm:$0xff] }
  0x10   : > { %705 = vmatprep.subr.mxu0 %v259_v5  ;;  %808 = vmatpush3.msra.mxu1 %v276_v8  ;;  %v273_v16 = vld [vmem:[%s1306_s1 + $0x158] sm:$0xff]  ;;  %v240_v17 = vld [vmem:[%s1306_s1 + $0x50] sm:$0xff]  ;;  %v255_v18 = vld [vmem:[%s1306_s1 + $0xc8] sm:$0xff] }
  0x11   : > { %706 = vmatpush3.msra.mxu0 %v243_v7  ;;  %809 = vmatprep.subr.mxu1 %v893_v4  ;;  %v272_v19 = vld [vmem:[%s1306_s1 + $0x150] sm:$0xff]  ;;  %v239_v20 = vld [vmem:[%s1306_s1 + $0x48] sm:$0xff]  ;;  %v254_v21 = vld [vmem:[%s1306_s1 + $0xc0] sm:$0xff] }
  0x12   : > { %707 = vmatprep.subr.mxu0 %v258_v9  ;;  %810 = vmatpush3.msra.mxu1 %v275_v10  ;;  %v271_v22 = vld [vmem:[%s1306_s1 + $0x148] sm:$0xff]  ;;  %v238_v23 = vld [vmem:[%s1306_s1 + $0x40] sm:$0xff]  ;;  %v253_v24 = vld [vmem:[%s1306_s1 + $0xb8] sm:$0xff] }
  0x13   : > { %708 = vmatpush3.msra.mxu0 %v242_v11  ;;  %811 = vmatprep.subr.mxu1 %v893_v4  ;;  %v270_v25 = vld [vmem:[%s1306_s1 + $0x140] sm:$0xff]  ;;  %v237_v26 = vld [vmem:[%s1306_s1 + $0x38] sm:$0xff]  ;;  %v252_v27 = vld [vmem:[%s1306_s1 + $0xb0] sm:$0xff] }
  0x14   : > { %709 = vmatprep.subr.mxu0 %v257_v12  ;;  %812 = vmatpush3.msra.mxu1 %v274_v13  ;;  %v269_v28 = vld [vmem:[%s1306_s1 + $0x138] sm:$0xff]  ;;  %v236_v29 = vld [vmem:[%s1306_s1 + $0x30] sm:$0xff]  ;;  %v251_v30 = vld [vmem:[%s1306_s1 + $0xa8] sm:$0xff] }
  0x15   : > { %710 = vmatpush3.msra.mxu0 %v241_v14  ;;  %813 = vmatprep.subr.mxu1 %v893_v4  ;;  %v268_v31 = vld [vmem:[%s1306_s1 + $0x130] sm:$0xff]  ;;  %v235_v32 = vld [vmem:[%s1306_s1 + $0x28] sm:$0xff]  ;;  %v250_v33 = vld [vmem:[%s1306_s1 + $0xa0] sm:$0xff] }
  0x16   : > { %711 = vmatprep.subr.mxu0 %v256_v15  ;;  %814 = vmatpush3.msra.mxu1 %v273_v16  ;;  %v267_v34 = vld [vmem:[%s1306_s1 + $0x128] sm:$0xff]  ;;  %v234_v35 = vld [vmem:[%s1306_s1 + $0x20] sm:$0xff]  ;;  %v249_v36 = vld [vmem:[%s1306_s1 + $0x98] sm:$0xff] }
  0x17   : > { %712 = vmatpush3.msra.mxu0 %v240_v17  ;;  %815 = vmatprep.subr.mxu1 %v893_v4  ;;  %v266_v37 = vld [vmem:[%s1306_s1 + $0x120] sm:$0xff]  ;;  %v233_v38 = vld [vmem:[%s1306_s1 + $0x18] sm:$0xff]  ;;  %v248_v39 = vld [vmem:[%s1306_s1 + $0x90] sm:$0xff] }
  0x18   : > { %713 = vmatprep.subr.mxu0 %v255_v18  ;;  %816 = vmatpush3.msra.mxu1 %v272_v19  ;;  %v265_v40 = vld [vmem:[%s1306_s1 + $0x118] sm:$0xff]  ;;  %v232_v41 = vld [vmem:[%s1306_s1 + $0x10] sm:$0xff]  ;;  %v247_v42 = vld [vmem:[%s1306_s1 + $0x88] sm:$0xff] }
  0x19   : > { %714 = vmatpush3.msra.mxu0 %v239_v20  ;;  %817 = vmatprep.subr.mxu1 %v893_v4  ;;  %v1092_v43 = vld [vmem:[%s215_s6] sm:$0xff]  ;;  %v231_v44 = vld [vmem:[%s1306_s1 + $0x8] sm:$0xff]  ;;  %v264_v45 = vld [vmem:[%s1306_s1 + $0x110] sm:$0xff] }
  0x1a   : > { %715 = vmatprep.subr.mxu0 %v254_v21  ;;  %818 = vmatpush3.msra.mxu1 %v271_v22  ;;  %v246_v46 = vld [vmem:[%s1306_s1 + $0x80] sm:$0xff]  ;;  %v222_v48 = vrot.slane %v1092_v43, 7  ;;  %v263_v49 = vld [vmem:[%s1306_s1 + $0x108] sm:$0xff]  ;;  %vm1112_vm2 = vmneg %vm224_vm1  ;;  %v226_v52 = vrot.slane %v1092_v43, 1 }
  0x1b   : > { %716 = vmatpush3.msra.mxu0 %v238_v23  ;;  %819 = vmatprep.subr.mxu1 %v893_v4  ;;  %v230_v47 = vld [vmem:[%s1306_s1] sm:$0xff]  ;;  %v464_v53 = vld [vmem:[%s1308_s3 + $0xf8] sm:$0xff]  ;;  %v463_v56 = vld [vmem:[%s1308_s3 + $0xf0] sm:$0xff] }
  0x1c   : > { %717 = vmatprep.subr.mxu0 %v253_v24  ;;  %820 = vmatpush3.msra.mxu1 %v270_v25  ;;  %v262_v51 = vld [vmem:[%s1306_s1 + $0x100] sm:$0xff]  ;;  %v448_v54 = vld [vmem:[%s1308_s3 + $0x78] sm:$0xff]  ;;  %v447_v57 = vld [vmem:[%s1308_s3 + $0x70] sm:$0xff] }
  0x1d   : > { %718 = vmatpush3.msra.mxu0 %v237_v26  ;;  %821 = vmatprep.subr.mxu1 %v893_v4  ;;  %v480_v55 = vld [vmem:[%s1308_s3 + $0x178] sm:$0xff]  ;;  %v479_v58 = vld [vmem:[%s1308_s3 + $0x170] sm:$0xff]  ;;  %v462_v59 = vld [vmem:[%s1308_s3 + $0xe8] sm:$0xff] }
  0x1e   : > { %719 = vmatprep.subr.mxu0 %v252_v27  ;;  %822 = vmatpush3.msra.mxu1 %v269_v28  ;;  %v446_v60 = vld [vmem:[%s1308_s3 + $0x68] sm:$0xff]  ;;  %v461_v62 = vld [vmem:[%s1308_s3 + $0xe0] sm:$0xff]  ;;  %v460_v1 = vld [vmem:[%s1308_s3 + $0xd8] sm:$0xff] }
  0x1f   : > { %720 = vmatpush3.msra.mxu0 %v236_v29  ;;  %823 = vmatprep.subr.mxu1 %v893_v4  ;;  %v478_v61 = vld [vmem:[%s1308_s3 + $0x168] sm:$0xff]  ;;  %v445_v63 = vld [vmem:[%s1308_s3 + $0x60] sm:$0xff]  ;;  %v444_v2 = vld [vmem:[%s1308_s3 + $0x58] sm:$0xff] }
  0x20   : > { %721 = vmatprep.subr.mxu0 %v251_v30  ;;  %824 = vmatpush3.msra.mxu1 %v268_v31  ;;  %v477_v0 = vld [vmem:[%s1308_s3 + $0x160] sm:$0xff]  ;;  %v476_v3 = vld [vmem:[%s1308_s3 + $0x158] sm:$0xff]  ;;  %v459_v5 = vld [vmem:[%s1308_s3 + $0xd0] sm:$0xff] }
  0x21   : > { %722 = vmatpush3.msra.mxu0 %v235_v32  ;;  %825 = vmatprep.subr.mxu1 %v893_v4  ;;  %v443_v6 = vld [vmem:[%s1308_s3 + $0x50] sm:$0xff]  ;;  %v458_v8 = vld [vmem:[%s1308_s3 + $0xc8] sm:$0xff]  ;;  %v457_v11 = vld [vmem:[%s1308_s3 + $0xc0] sm:$0xff] }
  0x22   : > { %723 = vmatprep.subr.mxu0 %v250_v33  ;;  %826 = vmatpush3.msra.mxu1 %v267_v34  ;;  %v475_v7 = vld [vmem:[%s1308_s3 + $0x150] sm:$0xff]  ;;  %v442_v9 = vld [vmem:[%s1308_s3 + $0x48] sm:$0xff]  ;;  %v441_v12 = vld [vmem:[%s1308_s3 + $0x40] sm:$0xff] }
  0x23   : > { %724 = vmatpush3.msra.mxu0 %v234_v35  ;;  %827 = vmatprep.subr.mxu1 %v893_v4  ;;  %v474_v10 = vld [vmem:[%s1308_s3 + $0x148] sm:$0xff]  ;;  %v473_v13 = vld [vmem:[%s1308_s3 + $0x140] sm:$0xff]  ;;  %v456_v14 = vld [vmem:[%s1308_s3 + $0xb8] sm:$0xff] }
  0x24   : > { %725 = vmatprep.subr.mxu0 %v249_v36  ;;  %828 = vmatpush3.msra.mxu1 %v266_v37  ;;  %v440_v15 = vld [vmem:[%s1308_s3 + $0x38] sm:$0xff]  ;;  %v455_v17 = vld [vmem:[%s1308_s3 + $0xb0] sm:$0xff]  ;;  %v454_v20 = vld [vmem:[%s1308_s3 + $0xa8] sm:$0xff] }
  0x25   : > { %726 = vmatpush3.msra.mxu0 %v233_v38  ;;  %829 = vmatprep.subr.mxu1 %v893_v4  ;;  %v472_v16 = vld [vmem:[%s1308_s3 + $0x138] sm:$0xff]  ;;  %v439_v18 = vld [vmem:[%s1308_s3 + $0x30] sm:$0xff]  ;;  %v438_v21 = vld [vmem:[%s1308_s3 + $0x28] sm:$0xff] }
  0x26   : > { %727 = vmatprep.subr.mxu0 %v248_v39  ;;  %830 = vmatpush3.msra.mxu1 %v265_v40  ;;  %v471_v19 = vld [vmem:[%s1308_s3 + $0x130] sm:$0xff]  ;;  %v470_v22 = vld [vmem:[%s1308_s3 + $0x128] sm:$0xff]  ;;  %v453_v23 = vld [vmem:[%s1308_s3 + $0xa0] sm:$0xff] }
  0x27   : > { %728 = vmatpush3.msra.mxu0 %v232_v41  ;;  %831 = vmatprep.subr.mxu1 %v893_v4  ;;  %v437_v24 = vld [vmem:[%s1308_s3 + $0x20] sm:$0xff]  ;;  %v452_v26 = vld [vmem:[%s1308_s3 + $0x98] sm:$0xff]  ;;  %v451_v29 = vld [vmem:[%s1308_s3 + $0x90] sm:$0xff] }
  0x28   : > { %729 = vmatprep.subr.mxu0 %v247_v42  ;;  %349 = vmatprep.mubr.f32.mxu0 %v1092_v43  ;;  %v469_v25 = vld [vmem:[%s1308_s3 + $0x120] sm:$0xff]  ;;  %v436_v27 = vld [vmem:[%s1308_s3 + $0x18] sm:$0xff]  ;;  %v435_v30 = vld [vmem:[%s1308_s3 + $0x10] sm:$0xff] }
  0x29   : > { %730 = vmatpush3.msra.mxu0 %v231_v44  ;;  %832 = vmatpush3.msra.mxu1 %v264_v45  ;;  %v468_v28 = vld [vmem:[%s1308_s3 + $0x118] sm:$0xff]  ;;  %v467_v31 = vld [vmem:[%s1308_s3 + $0x110] sm:$0xff]  ;;  %v450_v32 = vld [vmem:[%s1308_s3 + $0x88] sm:$0xff] }
  0x2a   : > { %731 = vmatprep.subr.mxu0 %v246_v46  ;;  %833 = vmatprep.subr.mxu1 %v893_v4  ;;  %v434_v33 = vld [vmem:[%s1308_s3 + $0x8] sm:$0xff]  ;;  %v449_v35 = vld [vmem:[%s1308_s3 + $0x80] sm:$0xff] }
  0x2b   : > { %732 = vmatpush3.msra.mxu0 %v230_v47  ;;  %834 = vmatpush3.msra.mxu1 %v263_v49  ;;  %v466_v34 = vld [vmem:[%s1308_s3 + $0x108] sm:$0xff]  ;;  %v433_v36 = vld [vmem:[%s1308_s3] sm:$0xff] }
  0x2c   : > { %693 = vmatmul.mubr.msk.f32.vlgmr.msra.gmra.mxu0 %vm1112_vm2, %v222_v48  ;;  %835 = vmatprep.subr.mxu1 %v893_v4  ;;  %v465_v37 = vld [vmem:[%s1308_s3 + $0x100] sm:$0xff] }
  0x2d   : > { %836 = vmatpush3.msra.mxu1 %v262_v51  ;;  %753 = vmatprep.subr.mxu0 %v464_v53  ;;  %v691_v40 = vld [vmem:[%s1307_s2] ss:$0 sm:$0xff] }
  0x2e   : > { %838 = vmatmul.mubr.msk.f32.vlgmr.msra.gmra.mxu1 %vm228_vm3, %v226_v52  ;;  %840 = vmatprep.subr.mxu1 %v893_v4  ;;  %v695_v52 = vld [vmem:[%s1309_s4] ss:$0 sm:$0xff] }
  0x2f   : > { %754 = vmatpush3.msra.mxu0 %v448_v54  ;;  %841 = vmatpush3.msra.mxu1 %v480_v55 }
  0x30   : > { %755 = vmatprep.subr.mxu0 %v463_v56  ;;  %842 = vmatprep.subr.mxu1 %v893_v4 }
  0x31   : > { %756 = vmatpush3.msra.mxu0 %v447_v57  ;;  %843 = vmatpush3.msra.mxu1 %v479_v58 }
  0x32   : > { %757 = vmatprep.subr.mxu0 %v462_v59  ;;  %844 = vmatprep.subr.mxu1 %v893_v4 }
  0x33   : > { %758 = vmatpush3.msra.mxu0 %v446_v60  ;;  %845 = vmatpush3.msra.mxu1 %v478_v61 }
  0x34   : > { %759 = vmatprep.subr.mxu0 %v461_v62  ;;  %846 = vmatprep.subr.mxu1 %v893_v4 }
  0x35   : > { %760 = vmatpush3.msra.mxu0 %v445_v63  ;;  %847 = vmatpush3.msra.mxu1 %v477_v0 }
  0x36   : > { %761 = vmatprep.subr.mxu0 %v460_v1  ;;  %848 = vmatprep.subr.mxu1 %v893_v4 }
  0x37   : > { %762 = vmatpush3.msra.mxu0 %v444_v2  ;;  %849 = vmatpush3.msra.mxu1 %v476_v3 }
  0x38   : > { %763 = vmatprep.subr.mxu0 %v459_v5  ;;  %850 = vmatprep.subr.mxu1 %v893_v4 }
  0x39   : > { %764 = vmatpush3.msra.mxu0 %v443_v6  ;;  %851 = vmatpush3.msra.mxu1 %v475_v7 }
  0x3a   : > { %765 = vmatprep.subr.mxu0 %v458_v8  ;;  %852 = vmatprep.subr.mxu1 %v893_v4 }
  0x3b   : > { %766 = vmatpush3.msra.mxu0 %v442_v9  ;;  %853 = vmatpush3.msra.mxu1 %v474_v10 }
  0x3c   : > { %767 = vmatprep.subr.mxu0 %v457_v11  ;;  %854 = vmatprep.subr.mxu1 %v893_v4 }
  0x3d   : > { %768 = vmatpush3.msra.mxu0 %v441_v12  ;;  %855 = vmatpush3.msra.mxu1 %v473_v13 }
  0x3e   : > { %769 = vmatprep.subr.mxu0 %v456_v14  ;;  %856 = vmatprep.subr.mxu1 %v893_v4 }
  0x3f   : > { %770 = vmatpush3.msra.mxu0 %v440_v15  ;;  %857 = vmatpush3.msra.mxu1 %v472_v16 }
  0x40   : > { %771 = vmatprep.subr.mxu0 %v455_v17  ;;  %858 = vmatprep.subr.mxu1 %v893_v4 }
  0x41   : > { %872 = vmatprep.mubr.msk.f32.mxu1 %vm894_vm0, %v893_v4  ;;  %772 = vmatpush3.msra.mxu0 %v439_v18 }
  0x42   : > { %859 = vmatpush3.msra.mxu1 %v471_v19  ;;  %773 = vmatprep.subr.mxu0 %v454_v20 }
  0x43   : > { %860 = vmatprep.subr.mxu1 %v893_v4  ;;  %774 = vmatpush3.msra.mxu0 %v438_v21 }
  0x44   : > { %861 = vmatpush3.msra.mxu1 %v470_v22  ;;  %775 = vmatprep.subr.mxu0 %v453_v23 }
  0x45   : > { %862 = vmatprep.subr.mxu1 %v893_v4  ;;  %776 = vmatpush3.msra.mxu0 %v437_v24 }
  0x46   : > { %863 = vmatpush3.msra.mxu1 %v469_v25  ;;  %777 = vmatprep.subr.mxu0 %v452_v26 }
  0x47   : > { %864 = vmatprep.subr.mxu1 %v893_v4  ;;  %778 = vmatpush3.msra.mxu0 %v436_v27 }
  0x48   : > { %865 = vmatpush3.msra.mxu1 %v468_v28  ;;  %779 = vmatprep.subr.mxu0 %v451_v29 }
  0x49   : > { %866 = vmatprep.subr.mxu1 %v893_v4  ;;  %780 = vmatpush3.msra.mxu0 %v435_v30 }
  0x4a   : > { %867 = vmatpush3.msra.mxu1 %v467_v31  ;;  %781 = vmatprep.subr.mxu0 %v450_v32 }
  0x4b   : > { %868 = vmatprep.subr.mxu1 %v893_v4  ;;  %782 = vmatpush3.msra.mxu0 %v434_v33 }
  0x4c   : > { %869 = vmatpush3.msra.mxu1 %v466_v34  ;;  %783 = vmatprep.subr.mxu0 %v449_v35 }
  0x4d   : > { %870 = vmatprep.subr.mxu1 %v893_v4  ;;  %784 = vmatpush3.msra.mxu0 %v433_v36 }
  0x4e   : > { %871 = vmatpush3.msra.mxu1 %v465_v37 }
  0xec   : > { %v733_v38 = vpop.f32.mrf.mxu0 }
  0xee   : > { %v734_v39 = vpop.f32.mrf.mxu0  ;;  %v421_v41 = vpop.f32.mrf.mxu1 }
  0xef   : > { %v735_v42 = vadd.f32 %v734_v39, %v733_v38 }
  0xf0   : > { %v839_v44 = vpop.f32.mrf.mxu1 }
  0xf1   : > { %v352_v4 = vadd.f32 %v735_v42, %v691_v40 }
  0xf3   : > { %v422_v45 = vadd.f32 %v421_v41, %v352_v4 }
  0xf5   : > { %v425_v46 = vmax.f32 %v422_v45, 0.0 }
  0xf7   : > { %v427_v47 = vrot.slane %v425_v46, 7  ;;  %v430_v48 = vrot.slane %v425_v46, 1  ;;  %552 = vmatprep.mubr.f32.mxu0 %v425_v46 }
  0xf9   : > { %697 = vmatmul.mubr.msk.f32.vlgmr.msra.gmra.mxu0 %vm1112_vm2, %v427_v47  ;;  %873 = vmatmul.mubr.msk.f32.vlgmr.msra.gmra.mxu1 %vm228_vm3, %v430_v48 }
 0x1b9   : > { %v785_v49 = vpop.f32.mrf.mxu0  ;;  %v624_v51 = vpop.f32.mrf.mxu1 }
 0x1bb   : > { %v786_v53 = vpop.f32.mrf.mxu0  ;;  %v874_v54 = vpop.f32.mrf.mxu1 }
 0x1bc   : > { %v787_v55 = vadd.f32 %v786_v53, %v785_v49 }
 0x1be   : > { %v555_v56 = vadd.f32 %v787_v55, %v695_v52 }
 0x1c0   : > { %v625_v57 = vadd.f32 %v624_v51, %v555_v56 }
 0x1c2   : > { %v628_v58 = vadd.f32 %v625_v57, %v1092_v43 }
 0x1c4   : > { %v629_v50 = vmax.f32 %v628_v58, 0.0 }
 0x1c6   : > { %630 = vst [vmem:[%s219_s22] sm:$0xff] %v629_v50 }
 0x1c7 PF: > { %s15_s18 = sadd.s32 1, %s891_s18  }
 0x1c8   : > { %p12_p4 = scmp.ge.s32.totalorder %s15_s18, 4  }
 0x1ca   :  { %14 = sbr.rel (!%p12_p4) target bundleno = 1 (0x1), region = 70 }

</bundles_post_ra>
